<compile_context>
chip_gen: v5e
topology: v5e:2x2
jax: 0.10.0
libtpu: 0.0.40
codegen_flags: <defaults>
</compile_context>

<pallas_src>
import functools
import math
import numpy as np
import jax
import jax.numpy as jnp
from jax.experimental import pallas as pl
from jax.experimental.pallas import tpu as pltpu


def _round_up(x, m):
    return ((x + m - 1) // m) * m


def _gammatone_conv_kernel(filt_ref, x_ref, o_ref, win_ref, *, tw, group):
    """One (batch, L-tile) grid step: im2col into VMEM scratch + one MXU matmul.

    filt_ref : (nf_pad, fd_pad)  precomputed, L2-normalized gammatone bank (resident)
    x_ref    : (1, l_pad)        this batch element's zero-padded signal (resident per batch)
    o_ref    : (nf_pad, tl)      lane-dense output tile
    win_ref  : (fd_pad, tl)      VMEM scratch im2col window
    """
    fd_pad, tl = win_ref.shape
    base = pl.multiple_of(pl.program_id(1) * tl, 128)
    # Single aligned load of this tile's receptive field (tl + padded-Fd lanes).
    chunk = x_ref[:, pl.ds(base, tw)]                                   # (1, tw) f32
    # Build win[k, i] = x[base + i + k] in sublane groups: at most `group` shifted rows are
    # live in vregs at a time, and every scratch store is a full, pack-aligned sublane group.
    for g in range(fd_pad // group):
        rows = [chunk[:, g * group + r: g * group + r + tl] for r in range(group)]
        win_ref[g * group:(g + 1) * group, :] = (
            jnp.concatenate(rows, axis=0).astype(win_ref.dtype))
    # Stride-1 conv1d (PyTorch cross-correlation) for this tile as one MXU matmul.
    out = jnp.dot(filt_ref[...], win_ref[...], preferred_element_type=jnp.float32)
    o_ref[...] = out.astype(o_ref.dtype)


class GammaToneConv1d:
    """JAX/Pallas port of GammaToneConv1d.forward (filters regenerated from params each call)."""

    def __init__(self, N_filt, Filt_dim, fs, *, compute_dtype=jnp.float32, tile_l=1024):
        nb = N_filt
        # deterministic parameter init, identical to the PyTorch __init__
        f = np.linspace(0.0, 0.5, nb, endpoint=False)
        self.f = jnp.asarray(f, jnp.float32).reshape(nb, 1)
        self.b = jnp.full((nb, 1), 1.0 / nb / 4.0, dtype=jnp.float32)
        self.order = jnp.full((nb, 1), 4.0, dtype=jnp.float32)
        self.N_filt = N_filt
        self.Filt_dim = Filt_dim
        self.fs = float(fs)
        # torch.linspace(0, N, steps=N) / fs  (N points, endpoint inclusive)
        t = np.linspace(0.0, float(Filt_dim), Filt_dim) / self.fs
        self.t = jnp.asarray(t, jnp.float32).reshape(1, Filt_dim)
        # compute_dtype=jnp.bfloat16 recommended on v6e/v7x (bf16 MXU, f32 accumulation)
        self.compute_dtype = jnp.dtype(compute_dtype)
        self.tile_l = max(128, _round_up(int(tile_l), 128))

    def _filters(self):
        # Gammatone bank built once per call in plain JAX (EUP/XLU work hoisted out of
        # the per-batch / per-tile Pallas grid).
        t, f, bw = self.t, self.f, self.b
        alpha = self.order - 1.0
        two_pi = 2.0 * math.pi
        # t ** alpha with the t == 0 sample handled explicitly (0 ** positive == 0)
        safe_t = jnp.where(t > 0.0, t, 1.0)
        t_pow = jnp.where(t > 0.0, jnp.exp(alpha * jnp.log(safe_t)), 0.0)        # (Nf, Fd)
        gtone = t_pow * jnp.exp(-two_pi * bw * t) * jnp.cos(two_pi * f * t)      # (Nf, Fd)
        norm = jnp.sqrt(jnp.sum(gtone * gtone, axis=-1, keepdims=True))          # (Nf, 1)
        return gtone / jnp.maximum(norm, 1e-12)                                  # (Nf, Fd)

    def _choose_tile(self, l_out, nf_pad, fd_pad, ds):
        """Largest lane-dense tile whose VMEM footprint fits a conservative ~12 MiB budget."""
        budget = 12 * 1024 * 1024
        tl = min(self.tile_l, _round_up(l_out, 128))
        while tl > 128:
            n_tiles = (l_out + tl - 1) // tl
            tw = tl + _round_up(fd_pad, 128)
            l_pad = (n_tiles - 1) * tl + tw
            vmem = (2 * nf_pad * fd_pad * ds      # filters (double-buffered)
                    + 2 * l_pad * 4               # resident signal (double-buffered)
                    + 2 * nf_pad * tl * 4         # output tile (double-buffered)
                    + fd_pad * tl * ds)           # im2col window scratch
            if vmem <= budget:
                break
            tl -= 128
        return tl

    def __call__(self, x):
        B, C, L = x.shape
        assert C == 1, "conv1d weight has in_channels == 1, so x must be (B, 1, L)"
        nf, fd = self.N_filt, self.Filt_dim
        assert L >= fd, "input length must be >= Filt_dim (stride=1, no padding)"
        l_out = L - fd + 1
        dt = self.compute_dtype
        group = 8 if dt.itemsize == 4 else 16            # full sublane-pack store granule

        nf_pad = _round_up(nf, 8)                        # sublane-aligned filter rows
        fd_pad = _round_up(fd, group)                    # whole sublane groups in the window
        tl = self._choose_tile(l_out, nf_pad, fd_pad, dt.itemsize)   # lane-dense output tile
        n_tiles = (l_out + tl - 1) // tl
        l_out_pad = n_tiles * tl
        tw = tl + _round_up(fd_pad, 128)                 # receptive field width of one tile
        l_pad = (n_tiles - 1) * tl + tw                  # >= L, multiple of 128

        # Hoisted filter bank, zero-padded to (nf_pad, fd_pad), cast to the compute dtype.
        filt = jnp.pad(self._filters().astype(dt), ((0, nf_pad - nf), (0, fd_pad - fd)))
        x_pad = jnp.pad(x.astype(jnp.float32), ((0, 0), (0, 0), (0, l_pad - L)))

        kernel = functools.partial(_gammatone_conv_kernel, tw=tw, group=group)
        grid_spec = pltpu.PrefetchScalarGridSpec(
            num_scalar_prefetch=0,
            grid=(B, n_tiles),
            in_specs=[
                pl.BlockSpec((nf_pad, fd_pad), lambda i, j: (0, 0)),      # filters, resident
                pl.BlockSpec((None, 1, l_pad), lambda i, j: (i, 0, 0)),   # signal, resident / batch
            ],
            out_specs=pl.BlockSpec((None, nf_pad, tl), lambda i, j: (i, 0, j)),
            scratch_shapes=[pltpu.VMEM((fd_pad, tl), dt)],
        )
        out = pl.pallas_call(
            kernel,
            out_shape=jax.ShapeDtypeStruct((B, nf_pad, l_out_pad), jnp.float32),
            grid_spec=grid_spec,
            compiler_params=pltpu.CompilerParams(
                dimension_semantics=("parallel", "parallel")),
            cost_estimate=pl.CostEstimate(
                flops=2 * B * nf * fd * l_out,
                transcendentals=0,
                bytes_accessed=4 * (B * L + B * nf * l_out + nf * fd)),
        )(filt, x_pad)
        # TODO(synk): for very small N_filt / Filt_dim one could additionally stack several
        # batch elements' window tiles along the lane axis per grid step to raise MXU occupancy;
        # for extremely long signals the per-batch resident x block could be windowed instead.
        return out[:, :nf, :l_out]


if __name__ == "__main__":
    N_filt, Filt_dim, fs = 8, 16, 16000
    B, L = 2, 64

    key = jax.random.PRNGKey(0)
    x = jax.random.normal(key, (B, 1, L), dtype=jnp.float32)

    mod = GammaToneConv1d(N_filt, Filt_dim, fs)
    out = jax.block_until_ready(mod(x))

    # pure-numpy reference (same float32 params / time grid) for a sanity check
    t = np.asarray(mod.t)[0]
    fpar = np.asarray(mod.f)[:, 0]
    bpar = np.asarray(mod.b)[:, 0]
    opar = np.asarray(mod.order)[:, 0]
    filters = np.zeros((N_filt, Filt_dim), np.float32)
    for i in range(N_filt):
        g = (t ** (opar[i] - 1.0)
             * np.exp(-2.0 * math.pi * bpar[i] * t)
             * np.cos(2.0 * math.pi * fpar[i] * t))
        filters[i] = g / np.linalg.norm(g)
    xn = np.asarray(x)
    L_out = L - Filt_dim + 1
    ref = np.zeros((B, N_filt, L_out), np.float32)
    for bi in range(B):
        for j in range(L_out):
            ref[bi, :, j] = filters @ xn[bi, 0, j:j + Filt_dim]

    assert out.shape == (B, N_filt, L_out)
    np.testing.assert_allclose(np.asarray(out), ref, rtol=2e-3, atol=2e-3)

    # bf16 MXU path (recommended on v6e/v7x): same kernel, bf16 filters+window, f32 accumulation.
    out_bf16 = jax.block_until_ready(
        GammaToneConv1d(N_filt, Filt_dim, fs, compute_dtype=jnp.bfloat16)(x))
    assert out_bf16.shape == (B, N_filt, L_out)
    np.testing.assert_allclose(np.asarray(out_bf16), ref, rtol=1e-1, atol=1e-1)

    print("KERNEL_OK")
</pallas_src>

<mosaic_0001>
module attributes {stable_mosaic.version = 11 : i64} {
  func.func @_gammatone_conv_kernel(%arg0: i32, %arg1: i32, %arg2: memref<8x16xf32, #tpu.memory_space<vmem>>, %arg3: memref<1x1x256xf32, #tpu.memory_space<vmem>>, %arg4: memref<1x8x128xf32, #tpu.memory_space<vmem>>, %arg5: memref<16x128xf32, #tpu.memory_space<vmem>>) attributes {dimension_semantics = [#tpu.dimension_semantics<parallel>, #tpu.dimension_semantics<parallel>], iteration_bounds = array<i64: 2, 1>, scalar_prefetch = 0 : i64, scratch_operands = 1 : i64, tpu.core_type = #tpu.core_type<tc>, window_params = [{pipeline_mode = #tpu.pipeline_mode<synchronous>, transform_indices = @transform_0, window_bounds = array<i64: 8, 16>}, {transform_indices = @transform_1, window_bounds = array<i64: 1, 1, 256>}, {transform_indices = @transform_2, window_bounds = array<i64: 1, 8, 128>}]} {
    %c128_i32 = arith.constant 128 : i32
    %0 = arith.muli %arg1, %c128_i32 : i32
    %1 = tpu.assume_multiple %0, 128 : i32
    %c0 = arith.constant 0 : index
    %c0_0 = arith.constant 0 : index
    %2 = arith.index_cast %1 : i32 to index
    %3 = vector.load %arg3[%c0, %c0_0, %2] : memref<1x1x256xf32, #tpu.memory_space<vmem>>, vector<1x1x256xf32>
    %4 = vector.shape_cast %3 : vector<1x1x256xf32> to vector<1x256xf32>
    %5 = vector.extract_strided_slice %4 {offsets = [0, 0], sizes = [1, 128], strides = [1, 1]} : vector<1x256xf32> to vector<1x128xf32>
    %6 = vector.extract_strided_slice %4 {offsets = [0, 1], sizes = [1, 128], strides = [1, 1]} : vector<1x256xf32> to vector<1x128xf32>
    %7 = vector.extract_strided_slice %4 {offsets = [0, 2], sizes = [1, 128], strides = [1, 1]} : vector<1x256xf32> to vector<1x128xf32>
    %8 = vector.extract_strided_slice %4 {offsets = [0, 3], sizes = [1, 128], strides = [1, 1]} : vector<1x256xf32> to vector<1x128xf32>
    %9 = vector.extract_strided_slice %4 {offsets = [0, 4], sizes = [1, 128], strides = [1, 1]} : vector<1x256xf32> to vector<1x128xf32>
    %10 = vector.extract_strided_slice %4 {offsets = [0, 5], sizes = [1, 128], strides = [1, 1]} : vector<1x256xf32> to vector<1x128xf32>
    %11 = vector.extract_strided_slice %4 {offsets = [0, 6], sizes = [1, 128], strides = [1, 1]} : vector<1x256xf32> to vector<1x128xf32>
    %12 = vector.extract_strided_slice %4 {offsets = [0, 7], sizes = [1, 128], strides = [1, 1]} : vector<1x256xf32> to vector<1x128xf32>
    %13 = tpu.concatenate %5, %6, %7, %8, %9, %10, %11, %12 in 0 : vector<1x128xf32>, vector<1x128xf32>, vector<1x128xf32>, vector<1x128xf32>, vector<1x128xf32>, vector<1x128xf32>, vector<1x128xf32>, vector<1x128xf32> -> vector<8x128xf32>
    %c0_1 = arith.constant 0 : index
    %c0_2 = arith.constant 0 : index
    %14 = vector.load %arg5[%c0_1, %c0_2] : memref<16x128xf32, #tpu.memory_space<vmem>>, vector<8x128xf32>
    tpu.vector_store %arg5[%c0_1, %c0_2], %13 {strides = array<i32>} : memref<16x128xf32, #tpu.memory_space<vmem>>, vector<8x128xf32>,
    %15 = vector.extract_strided_slice %4 {offsets = [0, 8], sizes = [1, 128], strides = [1, 1]} : vector<1x256xf32> to vector<1x128xf32>
    %16 = vector.extract_strided_slice %4 {offsets = [0, 9], sizes = [1, 128], strides = [1, 1]} : vector<1x256xf32> to vector<1x128xf32>
    %17 = vector.extract_strided_slice %4 {offsets = [0, 10], sizes = [1, 128], strides = [1, 1]} : vector<1x256xf32> to vector<1x128xf32>
    %18 = vector.extract_strided_slice %4 {offsets = [0, 11], sizes = [1, 128], strides = [1, 1]} : vector<1x256xf32> to vector<1x128xf32>
    %19 = vector.extract_strided_slice %4 {offsets = [0, 12], sizes = [1, 128], strides = [1, 1]} : vector<1x256xf32> to vector<1x128xf32>
    %20 = vector.extract_strided_slice %4 {offsets = [0, 13], sizes = [1, 128], strides = [1, 1]} : vector<1x256xf32> to vector<1x128xf32>
    %21 = vector.extract_strided_slice %4 {offsets = [0, 14], sizes = [1, 128], strides = [1, 1]} : vector<1x256xf32> to vector<1x128xf32>
    %22 = vector.extract_strided_slice %4 {offsets = [0, 15], sizes = [1, 128], strides = [1, 1]} : vector<1x256xf32> to vector<1x128xf32>
    %23 = tpu.concatenate %15, %16, %17, %18, %19, %20, %21, %22 in 0 : vector<1x128xf32>, vector<1x128xf32>, vector<1x128xf32>, vector<1x128xf32>, vector<1x128xf32>, vector<1x128xf32>, vector<1x128xf32>, vector<1x128xf32> -> vector<8x128xf32>
    %c8 = arith.constant 8 : index
    %c0_3 = arith.constant 0 : index
    %24 = vector.load %arg5[%c8, %c0_3] : memref<16x128xf32, #tpu.memory_space<vmem>>, vector<8x128xf32>
    tpu.vector_store %arg5[%c8, %c0_3], %23 {strides = array<i32>} : memref<16x128xf32, #tpu.memory_space<vmem>>, vector<8x128xf32>,
    %c0_4 = arith.constant 0 : index
    %c0_5 = arith.constant 0 : index
    %25 = vector.load %arg2[%c0_4, %c0_5] : memref<8x16xf32, #tpu.memory_space<vmem>>, vector<8x16xf32>
    %c0_6 = arith.constant 0 : index
    %c0_7 = arith.constant 0 : index
    %26 = vector.load %arg5[%c0_6, %c0_7] : memref<16x128xf32, #tpu.memory_space<vmem>>, vector<16x128xf32>
    %cst = arith.constant dense<0.000000e+00> : vector<8x128xf32>
    %27 = tpu.matmul %25, %26, %cst {dimension_numbers = #tpu.dot_dimension_numbers<[1], [0], [0], [1], [0, 0, 1, 1], [], []>} : vector<8x16xf32>, vector<16x128xf32>, vector<8x128xf32> -> vector<8x128xf32>
    %c0_8 = arith.constant 0 : index
    %c0_9 = arith.constant 0 : index
    %c0_10 = arith.constant 0 : index
    %28 = vector.load %arg4[%c0_8, %c0_9, %c0_10] : memref<1x8x128xf32, #tpu.memory_space<vmem>>, vector<1x8x128xf32>
    %29 = vector.shape_cast %28 : vector<1x8x128xf32> to vector<8x128xf32>
    %30 = vector.shape_cast %27 : vector<8x128xf32> to vector<1x8x128xf32>
    tpu.vector_store %arg4[%c0_8, %c0_9, %c0_10], %30 {strides = array<i32>} : memref<1x8x128xf32, #tpu.memory_space<vmem>>, vector<1x8x128xf32>,
    return
  }
  func.func @transform_0(%arg0: i32, %arg1: i32) -> (i32, i32) {
    %c0_i32 = arith.constant 0 : i32
    %c0_i32_0 = arith.constant 0 : i32
    %c0_i32_1 = arith.constant 0 : i32
    return %c0_i32, %c0_i32_0 : i32, i32
  }
  func.func @transform_1(%arg0: i32, %arg1: i32) -> (i32, i32, i32) {
    %c0_i32 = arith.constant 0 : i32
    %c0_i32_0 = arith.constant 0 : i32
    %c0_i32_1 = arith.constant 0 : i32
    return %arg0, %c0_i32, %c0_i32_0 : i32, i32, i32
  }
  func.func @transform_2(%arg0: i32, %arg1: i32) -> (i32, i32, i32) {
    %c0_i32 = arith.constant 0 : i32
    %c0_i32_0 = arith.constant 0 : i32
    return %arg0, %c0_i32, %arg1 : i32, i32, i32
  }
}

</mosaic_0001>

<bundles_post_ra>
// kernel: tpu_custom_call.1
= control target key start
LH: loop header
LB: loop body
LE: loop exit
PB: predicated region body
PF: predicated region fallthrough
CT: control target
= control target key end

     0   :  { %7 = vsyncpa [#allocation4], 0  ;;  %s913_s0 = inlined_call_operand.hbm [shape: f32[8,16], index: 0, kind: input, shape index: {}]   ;;  %s914_s1 = inlined_call_operand.hbm [shape: f32[2,1,256], index: 1, kind: input, shape index: {}]   ;;  %s915_s2 = inlined_call_operand.hbm [shape: f32[2,8,128], index: 2, kind: output, shape index: {}]  }
   0x1   :  { %8 = vsyncpa [#allocation7], 0 }
   0x2   :  { %10 = vsyncpa [#allocation7 + $0x1], 0 }
   0x3   :  { %11 = vsyncpa [#allocation5], 0 }
   0x4   :  { %13 = vsyncpa [#allocation5 + $0x1], 0  ;;  %s741_s9 = smov 0   ;;  %s743_s10 = smov 0  }
   0x5   :  { %s745_s11 = smov 0   ;;  %s747_s12 = smov 0  }
   0x6   :  { %s749_s13 = smov 0   ;;  %s751_s14 = smov 0  }
   0x7 LB: > { %s432_s15 = sadd.s32 4294967295, %s715_s14   ;;  %s433_s16 = sadd.s32 4294967294, %s715_s14   ;;  %s715_s14 = sphi %s751_s14, %s19_s14   ;;  %s711_s13 = sphi %s749_s13, %s927_s13   ;;  %s707_s12 = sphi %s747_s12, %s926_s12   ;;  %s703_s11 = sphi %s745_s11, %s925_s11   ;;  %s699_s10 = sphi %s743_s10, %s924_s10   ;;  %s695_s9 = sphi %s741_s9, %s923_s9  }
   0x8   : > { %p72_p0 = scmp.ne.s32.totalorder %s699_s10, %s695_s9  ;;  %p775_p1 = scmp.eq.s32.totalorder %s432_s15, 0 }
   0x9   : > { %p779_p2 = scmp.eq.s32.totalorder %s432_s15, 1  ;;  %p104_p3 = scmp.eq.s32.totalorder %s433_s16, 1 }
   0xa   : > { %p785_p4 = por %p775_p1, %p72_p0  ;;  %p434_p5 = scmp.ge.s32.totalorder %s715_s14, 1 }
   0xb   : > { %p790_p6 = por %p104_p3, %p72_p0  ;;  %p111_p7 = scmp.lt.s32.totalorder %s715_s14, 3 }
   0xc   : > { %s123_s23 = sshll.u32 %s913_s0, 4  ;;  %p436_p9 = scmp.ge.s32.totalorder %s715_s14, 2  ;;  %s124_s23 = int_to_ptr.hbm [resolvable:$true] %s123_s23 }
   0xd   : > { %p798_p8 = pnand %p434_p5, %p111_p7  ;;  %s717_s25 = smov [#allocation3]  }
   0xe   : > { %s125_s26 = sshll.u32 %s717_s25, 4  ;;  %s31_s27 = sadd.s32 1, %s711_s13  ;;  %s126_s26 = int_to_ptr.vmem [resolvable:$true] %s125_s26 }
   0xf   : > { %p456_p10 = pneg %p798_p8  ;;  %p33_p12 = scmp.ge.s32.totalorder %s31_s27, 2 }
  0x10   : > { %s59_s28 = sadd.s32 1, %s703_s11  ;;  %p66_p13 = scmp.ne.s32.totalorder %s703_s11, %s699_s10 }
  0x11   : > { %p457_p11 = pnand %p456_p10, %p775_p1  ;;  %p67_p0 = scmp.eq.s32.totalorder %s715_s14, 0 }
  0x12   : > { %s929_s27 = smov (%p33_p12, %s31_s27), 0  ;;  %p820_p5 = por %p779_p2, %p66_p13 }
  0x13   : > { %459 = dma.hbm_to_vmem [thread:$0]  (!%p457_p11), %s124_s23, 128, %s126_s26, [#allocation4]  }
  0x14   : > { %p814_p3 = por %p67_p0, %p66_p13  ;;  %s56_s3 = ssub.s32 %s711_s13, %s929_s27 }
  0x15   : > { %p469_p7 = scmp.lt.s32.totalorder %s715_s14, 2  ;;  %p57_p10 = scmp.eq.s32.totalorder %s56_s3, 0 }
  0x16   : > { %s136_s4 = sand.u32 1, %s703_s11   ;;  %s438_s7 = sshll.u32 %s711_s13, 1 }
  0x17   : > { %s437_s5 = sshll.u32 %s136_s4, 1  ;;  %s144_s16 = scalar_lea.hbm %s914_s1, %s438_s7 }
  0x18   : > { %s829_s6 = scalar_select %p57_p10, %s703_s11, %s59_s28  }
  0x19   : > { %s140_s21 = scalar_lea.vmem [#allocation6], %s437_s5  ;;  %s146_s18 = sshll.u32 %s144_s16, 4  ;;  %s147_s18 = int_to_ptr.hbm [resolvable:$true] %s146_s18 }
  0x1a   : > { %s148_s22 = sshll.u32 %s140_s21, 4  ;;  %p461_p2 = pnand %p469_p7, %p814_p3  ;;  %s149_s22 = int_to_ptr.vmem [resolvable:$true] %s148_s22 }
  0x1b   : > { %s137_s23 = scalar_lea.sflag [#allocation7], %s136_s4  ;;  %157 = sbr.rel (%p798_p8) target bundleno = 429 (0x1ad), region = 28 }
  0x1c   : > { %463 = dma.hbm_to_vmem [thread:$0]  (!%p461_p2), %s147_s18, 32, %s149_s22, %s137_s23  }
  0x20   : > { %682 = dma.done.wait (%p775_p1), [#allocation4], 128  }
  0x21   : > { %684 = vsyncadd (%p775_p1), [#allocation4], 4294967168  ;;  %s844_s25 = sand.u32 1, %s699_s10  }
  0x22   : > { %s441_s26 = sshll.u32 %s844_s25, 1  ;;  %s165_s28 = scalar_lea.sflag [#allocation7], %s844_s25 }
  0x23   : > { %s168_s29 = scalar_lea.vmem [#allocation6], %s441_s26 }
  0x24   : > { %686 = dma.done.wait (%p785_p4), %s165_s28, 32  }
  0x25   : > { %688 = vsyncadd (%p785_p4), %s165_s28, 4294967264  ;;  %v194_v0 = vld [vmem:[%s168_s29] sm:$0x3]  ;;  %s718_s17 = smov 127   ;;  %s719_s24 = smov 125   ;;  %vm202_vm0 = vcmask 1039360  }
  0x26   : > { %v196_v1 = vperm.slane %v194_v0, 0  ;;  %v197_v2 = vperm.slane %v194_v0, 1  ;;  %s720_s3 = smov 123   ;;  %s721_s4 = smov 126   ;;  %vm247_vm1 = vcmask 1040384   ;;  %vm216_vm2 = vcmask 1022976  }
  0x27   : > { %s722_s5 = smov 124   ;;  %s723_s7 = smov 122   ;;  %vm230_vm3 = vcmask 1006592   ;;  %vm209_vm4 = vcmask 1031168   ;;  %vm249_vm5 = vcmask 1041408   ;;  %vm223_vm6 = vcmask 1014784  }
  0x28   : > { %v529_v3 = vpack.i.bf16 %v197_v2, %v196_v1  ;;  %s724_s8 = smov 121   ;;  %vm251_vm7 = vcmask 1042432   ;;  %vm253_vm8 = vcmask 1043456   ;;  %vm237_vm9 = vcmask 998400   ;;  %s725_s19 = smov 120   ;;  %v295_v58 = vld [vmem:[#allocation3] sm:$0xff] }
  0x29   : > { %vm255_vm10 = vcmask 1044480   ;;  %vm257_vm11 = vcmask 1045504   ;;  %vm244_vm12 = vcmask 990208   ;;  %vm259_vm13 = vcmask 1046528   ;;  %s442_s15 = sshll.u32 %s844_s25, 3  ;;  %s445_s16 = sshll.u32 %s707_s12, 3 }
  0x2a   : > { %530 = vrot.lane.b32.xlu0 %v529_v3, %s718_s17  ;;  %540 = vrot.lane.b32.xlu1 %v529_v3, %s719_s24  ;;  %vm291_vm14 = vcmask 982016   ;;  %vm298_vm15 = vcmask 130048   ;;  %s335_s18 = scalar_lea.hbm %s915_s2, %s445_s16  ;;  %s189_s23 = scalar_lea.vmem [#allocation8], %s442_s15 }
  0x2b   : > { %550 = vrot.lane.b32.xlu2 %v529_v3, %s720_s3  ;;  %s337_s26 = sshll.u32 %s189_s23, 4  ;;  %s339_s28 = sshll.u32 %s335_s18, 4  ;;  %s338_s26 = int_to_ptr.vmem [resolvable:$true] %s337_s26  ;;  %s340_s28 = int_to_ptr.hbm [resolvable:$true] %s339_s28 }
  0x2c   : > { %s324_s29 = scalar_lea.sflag [#allocation5], %s844_s25  ;;  %s643_s17 = sshra.s32 %s340_s28, 4  ;;  %s644_s17 = int_to_ptr.hbm [resolvable:$true] %s643_s17 }
  0x2d   : > { %s645_s24 = scalar_lea.hbm %s644_s17, 8  ;;  %p650_p11 = scmp.lt.s32.totalorder %s644_s17, %s915_s2 }
  0x2e   : > { %p646_p1 = scmp.ne.s32.totalorder %s644_s17, %s645_s24 }
  0x30   : > { %p647_p4 = pnand %p646_p1, %p820_p5 }
  0x32   : > { %535 = vrot.lane.b32.xlu0 %v529_v3, %s721_s4  ;;  %545 = vrot.lane.b32.xlu1 %v529_v3, %s722_s5  ;;  %p648_p8 = pneg %p647_p4  ;;  %s649_s4 = scalar_lea.hbm %s915_s2, 16 }
  0x33   : > { %555 = vrot.lane.b32.xlu2 %v529_v3, %s723_s7  ;;  %p651_p12 = scmp.lt.s32.totalorder %s649_s4, %s645_s24 }
  0x35   : > { %p652_p13 = por %p651_p12, %p650_p11 }
  0x37   : > { %p653_p0 = pnand %p652_p13, %p648_p8 }
  0x3a   : > { %560 = vrot.lane.b32.xlu0 %v529_v3, %s724_s8 }
  0x85   : > { %v551_v4 = vpop.permute.xlu2 %550 }
  0x86   : > { %v553_v12 = vunpack.i.h.bf16 %v551_v4  ;;  %v552_v13 = vunpack.i.l.bf16 %v551_v4 }
  0x88   : > { %v231_v37 = vsel %vm230_vm3, %v552_v13, %v553_v12 }
  0x8d   : > { %v556_v11 = vpop.permute.xlu2 %555 }
  0x8e   : > { %v558_v18 = vunpack.i.h.bf16 %v556_v11  ;;  %v557_v19 = vunpack.i.l.bf16 %v556_v11 }
  0x90   : > { %v238_v35 = vsel %vm237_vm9, %v557_v19, %v558_v18 }
  0x9c   : > { %v531_v5 = vpop.permute.xlu0 %530  ;;  %v541_v6 = vpop.permute.xlu1 %540 }
  0x9d   : > { %v533_v7 = vunpack.i.h.bf16 %v531_v5  ;;  %v532_v8 = vunpack.i.l.bf16 %v531_v5  ;;  %v543_v14 = vunpack.i.h.bf16 %v541_v6  ;;  %v542_v15 = vunpack.i.l.bf16 %v541_v6 }
  0x9f   : > { %v203_v9 = vsel %vm202_vm0, %v532_v8, %v533_v7  ;;  %v272_v24 = vsel %vm247_vm1, %v197_v2, %v533_v7  ;;  %v217_v29 = vsel %vm216_vm2, %v542_v15, %v543_v14 }
  0xa0   : > { %v248_v10 = vsel %vm247_vm1, %v194_v0, %v203_v9  ;;  %v271_v25 = vsel %vm247_vm1, %v196_v1, %v203_v9 }
  0xa4   : > { %v536_v16 = vpop.permute.xlu0 %535  ;;  %v546_v17 = vpop.permute.xlu1 %545 }
  0xa5   : > { %v538_v20 = vunpack.i.h.bf16 %v536_v16  ;;  %v537_v21 = vunpack.i.l.bf16 %v536_v16  ;;  %v548_v22 = vunpack.i.h.bf16 %v546_v17  ;;  %v547_v23 = vunpack.i.l.bf16 %v546_v17 }
  0xa7   : > { %v210_v26 = vsel %vm209_vm4, %v537_v21, %v538_v20  ;;  %v274_v27 = vsel %vm249_vm5, %v272_v24, %v538_v20  ;;  %v224_v28 = vsel %vm223_vm6, %v547_v23, %v548_v22 }
  0xa8   : > { %v250_v30 = vsel %vm249_vm5, %v248_v10, %v210_v26  ;;  %v273_v31 = vsel %vm249_vm5, %v271_v25, %v210_v26  ;;  %v276_v32 = vsel %vm251_vm7, %v274_v27, %v543_v14 }
  0xa9   : > { %v275_v33 = vsel %vm251_vm7, %v273_v31, %v217_v29  ;;  %v278_v34 = vsel %vm253_vm8, %v276_v32, %v548_v22  ;;  %v252_v36 = vsel %vm251_vm7, %v250_v30, %v217_v29 }
  0xaa   : > { %v277_v38 = vsel %vm253_vm8, %v275_v33, %v224_v28  ;;  %v254_v39 = vsel %vm253_vm8, %v252_v36, %v224_v28  ;;  %v280_v40 = vsel %vm255_vm10, %v278_v34, %v553_v12 }
  0xab   : > { %v256_v41 = vsel %vm255_vm10, %v254_v39, %v231_v37  ;;  %v279_v43 = vsel %vm255_vm10, %v277_v38, %v231_v37  ;;  %v282_v47 = vsel %vm257_vm11, %v280_v40, %v558_v18 }
  0xac   : > { %v561_v42 = vpop.permute.xlu0 %560  ;;  %v258_v44 = vsel %vm257_vm11, %v256_v41, %v238_v35  ;;  %v281_v49 = vsel %vm257_vm11, %v279_v43, %v238_v35 }
  0xad   : > { %v563_v45 = vunpack.i.h.bf16 %v561_v42  ;;  %v562_v46 = vunpack.i.l.bf16 %v561_v42 }
  0xaf   : > { %v245_v48 = vsel %vm244_vm12, %v562_v46, %v563_v45  ;;  %v284_v50 = vsel %vm259_vm13, %v282_v47, %v563_v45 }
  0xb0   : > { %v283_v51 = vsel %vm259_vm13, %v281_v49, %v245_v48  ;;  %v260_v52 = vsel %vm259_vm13, %v258_v44, %v245_v48 }
  0xb1   : > { %v564_v53 = vpack.i.bf16 %v284_v50, %v283_v51 }
  0xb3   : > { %565 = vrot.lane.b32.xlu1 %v564_v53, %s725_s19 }
 0x125   : > { %v566_v54 = vpop.permute.xlu1 %565 }
 0x126   : > { %v568_v55 = vunpack.i.h.bf16 %v566_v54  ;;  %v567_v56 = vunpack.i.l.bf16 %v566_v54 }
 0x128   : > { %v292_v57 = vsel %vm291_vm14, %v567_v56, %v568_v55 }
 0x129   : > { %316 = vmatpush.msra.mxu0 %v292_v57 }
 0x12b   : > { %317 = vmatpush.msra.mxu0 %v260_v52 }
 0x12c   : > { %443 = vmatmul.msk.f32.vlgmr.msra.gmra.mxu0 %vm298_vm15, %v295_v58 }
 0x1a9   : > { %v319_v59 = vpop.f32.mrf.mxu0 }
 0x1aa   : > { %322 = vst [vmem:[%s189_s23] sm:$0xff] %v319_v59 }
 0x1ab   : > { %656 = shalt.err (!%p653_p0)
}
 0x1ac   : > { %454 = dma.vmem_to_hbm [thread:$0]  (%p820_p5), %s338_s26, 128, %s340_s28, %s324_s29  }
 0x1ad PF: > { %s351_s25 = sand.u32 1, %s695_s9   ;;  %p465_p3 = pnand %p436_p9, %p790_p6 }
 0x1ae   : > { %s352_s8 = scalar_lea.sflag [#allocation5], %s351_s25 }
 0x1af   : > { %p466_p7 = pneg %p465_p3 }
 0x1b1   : > { %690 = dma.done.wait (%p466_p7), %s352_s8, 128  }
 0x1b2   : > { %692 = vsyncadd (%p466_p7), %s352_s8, 4294967168  ;;  %s19_s14 = sadd.s32 1, %s715_s14   ;;  %s923_s9 = smov %s699_s10 }
 0x1b3   : > { %p16_p10 = scmp.ge.s32.totalorder %s19_s14, 4   ;;  %s924_s10 = smov %s703_s11 }
 0x1b4   : > { %s925_s11 = smov %s829_s6  ;;  %s926_s12 = smov %s711_s13 }
 0x1b5   : > { %s927_s13 = smov %s929_s27  ;;  %18 = sbr.rel (!%p16_p10) target bundleno = 7 (0x7), region = 79 }
 0x1ba   :  { %358 = vsyncpa [#allocation4], 1 }
 0x1bb   :  { %360 = vsyncpa [#allocation4 + $0x1], 1 }
 0x1bc   :  { %361 = vsyncpa [#allocation7], 1 }
 0x1bd   :  { %363 = vsyncpa [#allocation7 + $0x1], 1 }
 0x1be   :  { %364 = vsyncpa [#allocation5], 1 }
 0x1bf   :  { %366 = vsyncpa [#allocation5 + $0x1], 1 }

</bundles_post_ra>
